<compile_context>
chip_gen: v5e
topology: v5e:2x2
jax: 0.10.0
libtpu: 0.0.40
codegen_flags: <defaults>
</compile_context>

<pallas_src>
import math

import jax
import jax.numpy as jnp
from jax.experimental import pallas as pl
from jax.experimental.pallas import tpu as pltpu

_EPS = 1e-5
_VPU_CONV_MAX_TAPS = 32   # C_in*K at or below this -> VPU FMA conv (MXU would be <7% utilized)


def _vmem_limit_bytes():
    """Scoped-VMEM budget derived from the chip: ~96 MiB on v5e/v6e, ~48 MiB on v7x."""
    try:
        cap = int(pltpu.get_tpu_info().vmem_capacity_bytes)
        return max(16 * 1024 * 1024, (cap * 3) // 4)
    except Exception:
        return 32 * 1024 * 1024   # conservative known-good fallback


_VMEM_LIMIT_BYTES = _vmem_limit_bytes()


# ---------------------------------------------------------------------------
# Fused per-layer kernel: conv + bias + GroupNorm(1) + ReLU (+ scaled skip)
# ---------------------------------------------------------------------------

def _make_block_kernel(Q, S, K, C_out, CinS, T_out, has_skip, eps, res_scale, use_vpu):
    n_elems = float(C_out * T_out)   # GroupNorm(num_groups=1) element count per sample

    def kernel(xp_ref, w_ref, b_ref, g_ref, be_ref, *rest):
        if has_skip:
            r_ref, o_ref = rest
        else:
            (o_ref,) = rest

        xall = xp_ref[0]        # (CinS, Tp)  polyphase input row, resident in VMEM
        w_all = w_ref[...]      # (Q, C_out, CinS)

        # ---- Conv1d + bias: Q lane-shifted contractions of the polyphase input -------------
        y = None
        if use_vpu:
            # Tiny contracted dim (first layers): VPU broadcast-FMA; the MXU would be ~idle.
            xf = xall.astype(jnp.float32)
            for q in range(Q):
                xq = xf[:, q:q + T_out]                     # (CinS, T_out) VMEM-local slice
                wq = w_all[q].astype(jnp.float32)           # (C_out, CinS)
                for j in range(CinS):
                    if q * S + (j % S) >= K:                # statically-zero padded tap
                        continue
                    term = wq[:, j:j + 1] * xq[j:j + 1, :]  # (C_out, T_out)
                    y = term if y is None else y + term
        else:
            # Wide layers: MXU matmuls, fp32 accumulation, operands in their native dtype.
            for q in range(Q):
                part = jnp.dot(w_all[q], xall[:, q:q + T_out],
                               preferred_element_type=jnp.float32)
                y = part if y is None else y + part
        y = y + b_ref[...].astype(jnp.float32)              # (C_out, T_out) fp32

        # ---- Dropout: eval-mode identity ----

        # ---- Fp32GroupNorm(num_groups=1): two-pass mean-shifted stats, fp32 throughout ----
        mean = jnp.sum(y) / n_elems
        yc = y - mean
        var = jnp.sum(yc * yc) / n_elems
        inv = jax.lax.rsqrt(var + eps)                      # EUP slot
        y = yc * inv
        y = y * g_ref[...].astype(jnp.float32) + be_ref[...].astype(jnp.float32)

        # ---- ReLU (+ fused skip connection) ----
        y = jnp.maximum(y, 0.0)
        if has_skip:
            y = (y + r_ref[0].astype(jnp.float32)) * res_scale

        o_ref[0] = y.astype(o_ref.dtype)

    return kernel


# ---------------------------------------------------------------------------
# Per-layer wrapper
# ---------------------------------------------------------------------------

def conv_block_pallas(x, weight, bias, gamma, beta, stride, residual=None,
                      res_scale=1.0, eps=_EPS):
    """One encoder block.  x: (B, C_in, T) NCT.  weight: (C_out, C_in, K).
    residual (optional): (B, C_out, T_out), already strided to match the block output.
    Returns (B, C_out, T_out) NCT."""
    B, C_in, T = x.shape
    C_out, _, K = weight.shape
    S = int(stride)
    T_out = (T - K) // S + 1
    Q = -(-K // S)                    # ceil(K / S) shifted contractions
    CinS = C_in * S
    Tp = -(-T // S)                   # polyphase length, always >= T_out + Q - 1
    out_dtype = x.dtype

    # Polyphase input xp[b, ci*S + r, u] = x[b, ci, u*S + r]: one 1x reshuffle of x in HBM
    # (replaces the K x im2col patch materialization).  At most S-1 zero columns of padding.
    if Tp * S != T:
        x = jnp.pad(x, ((0, 0), (0, 0), (0, Tp * S - T)))
    xp = x.reshape(B, C_in, Tp, S).transpose(0, 1, 3, 2).reshape(B, CinS, Tp)

    # Per-phase weights wq[q, co, ci*S + r] = w[co, ci, q*S + r]  (zero for q*S + r >= K).
    if Q * S != K:
        weight = jnp.pad(weight, ((0, 0), (0, 0), (0, Q * S - K)))
    wq = weight.reshape(C_out, C_in, Q, S).transpose(2, 0, 1, 3).reshape(Q, C_out, CinS)

    b2 = bias.reshape(C_out, 1)
    g2 = gamma.reshape(C_out, 1)
    be2 = beta.reshape(C_out, 1)

    has_skip = residual is not None
    use_vpu = (C_in * K) <= _VPU_CONV_MAX_TAPS
    kernel = _make_block_kernel(Q=Q, S=S, K=K, C_out=C_out, CinS=CinS, T_out=T_out,
                                has_skip=has_skip, eps=eps, res_scale=float(res_scale),
                                use_vpu=use_vpu)

    operands = [xp, wq, b2, g2, be2]
    in_specs = [
        pl.BlockSpec((1, CinS, Tp), lambda b: (b, 0, 0)),
        # Constant-index operands (fetched once across the batch grid).
        pl.BlockSpec((Q, C_out, CinS), lambda b: (0, 0, 0)),
        pl.BlockSpec((C_out, 1), lambda b: (0, 0)),
        pl.BlockSpec((C_out, 1), lambda b: (0, 0)),
        pl.BlockSpec((C_out, 1), lambda b: (0, 0)),
    ]
    if has_skip:
        operands.append(residual)
        in_specs.append(pl.BlockSpec((1, C_out, T_out), lambda b: (b, 0, 0)))

    return pl.pallas_call(
        kernel,
        out_shape=jax.ShapeDtypeStruct((B, C_out, T_out), out_dtype),
        grid=(B,),
        in_specs=in_specs,
        out_specs=pl.BlockSpec((1, C_out, T_out), lambda b: (b, 0, 0)),
        compiler_params=pltpu.CompilerParams(
            dimension_semantics=("parallel",),        # one sample per TensorCore on v7x
            vmem_limit_bytes=_VMEM_LIMIT_BYTES),
    )(*operands)


# ---------------------------------------------------------------------------
# Encoder forward + pure-JAX reference
# ---------------------------------------------------------------------------

def encoder_forward(x, params, conv_layers, skip_connections, residual_scale):
    """x: (B, T) raw waveform -> (B, C_last, T_last) in NCT layout (matches PyTorch)."""
    h = x[:, None, :]                                    # unsqueeze(1)
    rs = math.sqrt(residual_scale)
    for (dim, k, stride), p in zip(conv_layers, params):
        C_in, T = h.shape[1], h.shape[2]
        T_out = (T - k) // stride + 1
        residual = None
        if skip_connections and dim == C_in:
            step = T // T_out
            # TODO(synk): move this strided selection in-kernel (strided DMA / pl.ds stride).
            residual = h[:, :, ::step][:, :, :T_out]     # add+scale fused into the kernel
        h = conv_block_pallas(h, p["w"], p["b"], p["gamma"], p["beta"], stride,
                              residual=residual, res_scale=rs)
    return h


def encoder_reference(x, params, conv_layers, skip_connections, residual_scale):
    """Pure-JAX reference (conv_general_dilated + explicit GroupNorm) for validation."""
    h = x[:, None, :]
    rs = math.sqrt(residual_scale)
    for (dim, k, stride), p in zip(conv_layers, params):
        residual = h
        y = jax.lax.conv_general_dilated(
            h, p["w"], window_strides=(stride,), padding="VALID",
            dimension_numbers=("NCH", "OIH", "NCH"),
            precision=jax.lax.Precision.HIGHEST)
        y = y + p["b"][None, :, None]
        yf = y.astype(jnp.float32)
        mean = jnp.mean(yf, axis=(1, 2), keepdims=True)
        var = jnp.mean(jnp.square(yf - mean), axis=(1, 2), keepdims=True)
        yn = (yf - mean) * jax.lax.rsqrt(var + _EPS)
        yn = yn * p["gamma"][None, :, None] + p["beta"][None, :, None]
        h2 = jnp.maximum(yn, 0.0).astype(y.dtype)
        if skip_connections and h2.shape[1] == residual.shape[1]:
            tsz, r_tsz = h2.shape[2], residual.shape[2]
            res = residual[:, :, :: r_tsz // tsz][:, :, :tsz]
            h2 = (h2 + res) * rs
        h = h2
    return h


def init_params(conv_layers, key):
    params = []
    in_d = 1
    for (dim, k, _stride) in conv_layers:
        key, k1, k2, k3, k4 = jax.random.split(key, 5)
        params.append(
            dict(
                w=jax.random.normal(k1, (dim, in_d, k), jnp.float32) * 0.1,
                b=jax.random.normal(k2, (dim,), jnp.float32) * 0.1,
                gamma=1.0 + 0.1 * jax.random.normal(k3, (dim,), jnp.float32),
                beta=0.1 * jax.random.normal(k4, (dim,), jnp.float32),
            )
        )
        in_d = dim
    return params, key


if __name__ == "__main__":
    key = jax.random.PRNGKey(0)

    # --- Config A: small channels (VPU conv path on both layers), skip fires on layer 2 ---
    conv_layers_a = [(8, 3, 2), (8, 2, 2)]
    params_a, key = init_params(conv_layers_a, key)

    key, xk = jax.random.split(key)
    x_small = jax.random.normal(xk, (2, 64), jnp.float32)          # (batch, time)
    out_small = jax.block_until_ready(
        encoder_forward(x_small, params_a, conv_layers_a, True, 0.5))
    assert out_small.shape == (2, 8, 15), out_small.shape          # 64 -> 31 -> 15
    ref_small = encoder_reference(x_small, params_a, conv_layers_a, True, 0.5)
    assert jnp.allclose(out_small, ref_small, rtol=1e-3, atol=1e-3), \
        float(jnp.max(jnp.abs(out_small - ref_small)))

    # --- longer input: same kernels, larger VMEM-resident activation ---
    key, xk2 = jax.random.split(key)
    x_long = jax.random.normal(xk2, (2, 4096), jnp.float32)
    out_long = jax.block_until_ready(
        encoder_forward(x_long, params_a, conv_layers_a, True, 0.5))
    assert out_long.shape == (2, 8, 1023), out_long.shape          # 4096 -> 2047 -> 1023
    ref_long = encoder_reference(x_long, params_a, conv_layers_a, True, 0.5)
    assert jnp.allclose(out_long, ref_long, rtol=1e-3, atol=1e-3), \
        float(jnp.max(jnp.abs(out_long - ref_long)))

    # --- Config B: wider channels + a stride-1 layer -> exercises the MXU conv path and the
    #     fused skip with step == 1 ---
    conv_layers_b = [(8, 3, 2), (64, 2, 2), (64, 3, 1)]
    params_b, key = init_params(conv_layers_b, key)
    key, xk3 = jax.random.split(key)
    x_wide = jax.random.normal(xk3, (2, 128), jnp.float32)
    out_wide = jax.block_until_ready(
        encoder_forward(x_wide, params_b, conv_layers_b, True, 0.5))
    assert out_wide.shape == (2, 64, 29), out_wide.shape           # 128 -> 63 -> 31 -> 29
    ref_wide = encoder_reference(x_wide, params_b, conv_layers_b, True, 0.5)
    # MXU path runs at default (bf16-multiply) precision; GroupNorm keeps outputs O(1).
    assert jnp.allclose(out_wide, ref_wide, rtol=1e-2, atol=1e-2), \
        float(jnp.max(jnp.abs(out_wide - ref_wide)))

    print("KERNEL_OK")
</pallas_src>

<mosaic_0001>
module attributes {stable_mosaic.version = 11 : i64} {
  func.func @kernel(%arg0: i32, %arg1: memref<1x2x32xf32, #tpu.memory_space<vmem>>, %arg2: memref<2x8x2xf32, #tpu.memory_space<vmem>>, %arg3: memref<8x1xf32, #tpu.memory_space<vmem>>, %arg4: memref<8x1xf32, #tpu.memory_space<vmem>>, %arg5: memref<8x1xf32, #tpu.memory_space<vmem>>, %arg6: memref<1x8x31xf32, #tpu.memory_space<vmem>>) attributes {dimension_semantics = [#tpu.dimension_semantics<parallel>], iteration_bounds = array<i64: 2>, scalar_prefetch = 0 : i64, scratch_operands = 0 : i64, tpu.core_type = #tpu.core_type<tc>, window_params = [{transform_indices = @transform_0, window_bounds = array<i64: 1, 2, 32>}, {pipeline_mode = #tpu.pipeline_mode<synchronous>, transform_indices = @transform_1, window_bounds = array<i64: 2, 8, 2>}, {pipeline_mode = #tpu.pipeline_mode<synchronous>, transform_indices = @transform_2, window_bounds = array<i64: 8, 1>}, {pipeline_mode = #tpu.pipeline_mode<synchronous>, transform_indices = @transform_3, window_bounds = array<i64: 8, 1>}, {pipeline_mode = #tpu.pipeline_mode<synchronous>, transform_indices = @transform_4, window_bounds = array<i64: 8, 1>}, {transform_indices = @transform_5, window_bounds = array<i64: 1, 8, 31>}]} {
    %c0 = arith.constant 0 : index
    %c0_0 = arith.constant 0 : index
    %c0_1 = arith.constant 0 : index
    %0 = vector.load %arg1[%c0, %c0_0, %c0_1] : memref<1x2x32xf32, #tpu.memory_space<vmem>>, vector<1x2x32xf32>
    %1 = vector.shape_cast %0 : vector<1x2x32xf32> to vector<2x32xf32>
    %c0_2 = arith.constant 0 : index
    %c0_3 = arith.constant 0 : index
    %c0_4 = arith.constant 0 : index
    %2 = vector.load %arg2[%c0_2, %c0_3, %c0_4] : memref<2x8x2xf32, #tpu.memory_space<vmem>>, vector<2x8x2xf32>
    %3 = vector.extract_strided_slice %1 {offsets = [0, 0], sizes = [2, 31], strides = [1, 1]} : vector<2x32xf32> to vector<2x31xf32>
    %4 = vector.extract_strided_slice %2 {offsets = [0, 0, 0], sizes = [1, 8, 2], strides = [1, 1, 1]} : vector<2x8x2xf32> to vector<1x8x2xf32>
    %5 = vector.shape_cast %4 : vector<1x8x2xf32> to vector<8x2xf32>
    %6 = vector.extract_strided_slice %5 {offsets = [0, 0], sizes = [8, 1], strides = [1, 1]} : vector<8x2xf32> to vector<8x1xf32>
    %7 = vector.extract_strided_slice %3 {offsets = [0, 0], sizes = [1, 31], strides = [1, 1]} : vector<2x31xf32> to vector<1x31xf32>
    %8 = vector.broadcast %6 : vector<8x1xf32> to vector<8x31xf32>
    %9 = vector.broadcast %7 : vector<1x31xf32> to vector<8x31xf32>
    %10 = arith.mulf %8, %9 : vector<8x31xf32>
    %11 = vector.extract_strided_slice %5 {offsets = [0, 1], sizes = [8, 1], strides = [1, 1]} : vector<8x2xf32> to vector<8x1xf32>
    %12 = vector.extract_strided_slice %3 {offsets = [1, 0], sizes = [1, 31], strides = [1, 1]} : vector<2x31xf32> to vector<1x31xf32>
    %13 = vector.broadcast %11 : vector<8x1xf32> to vector<8x31xf32>
    %14 = vector.broadcast %12 : vector<1x31xf32> to vector<8x31xf32>
    %15 = arith.mulf %13, %14 : vector<8x31xf32>
    %16 = arith.addf %10, %15 : vector<8x31xf32>
    %17 = vector.extract_strided_slice %1 {offsets = [0, 1], sizes = [2, 31], strides = [1, 1]} : vector<2x32xf32> to vector<2x31xf32>
    %18 = vector.extract_strided_slice %2 {offsets = [1, 0, 0], sizes = [1, 8, 2], strides = [1, 1, 1]} : vector<2x8x2xf32> to vector<1x8x2xf32>
    %19 = vector.shape_cast %18 : vector<1x8x2xf32> to vector<8x2xf32>
    %20 = vector.extract_strided_slice %19 {offsets = [0, 0], sizes = [8, 1], strides = [1, 1]} : vector<8x2xf32> to vector<8x1xf32>
    %21 = vector.extract_strided_slice %17 {offsets = [0, 0], sizes = [1, 31], strides = [1, 1]} : vector<2x31xf32> to vector<1x31xf32>
    %22 = vector.broadcast %20 : vector<8x1xf32> to vector<8x31xf32>
    %23 = vector.broadcast %21 : vector<1x31xf32> to vector<8x31xf32>
    %24 = arith.mulf %22, %23 : vector<8x31xf32>
    %25 = arith.addf %16, %24 : vector<8x31xf32>
    %c0_5 = arith.constant 0 : index
    %c0_6 = arith.constant 0 : index
    %26 = vector.load %arg3[%c0_5, %c0_6] : memref<8x1xf32, #tpu.memory_space<vmem>>, vector<8x1xf32>
    %27 = vector.broadcast %26 : vector<8x1xf32> to vector<8x31xf32>
    %28 = arith.addf %25, %27 : vector<8x31xf32>
    %29 = vector.shape_cast %28 : vector<8x31xf32> to vector<1x8x31xf32>
    %cst = arith.constant dense<0.000000e+00> : vector<1xf32>
    %30 = vector.multi_reduction <add>, %29, %cst [1, 2] : vector<1x8x31xf32> to vector<1xf32>
    %31 = vector.shape_cast %30 : vector<1xf32> to vector<1x1x1xf32>
    %32 = vector.extract %31[0, 0, 0] : f32 from vector<1x1x1xf32>
    %cst_7 = arith.constant 2.480000e+02 : f32
    %33 = arith.divf %32, %cst_7 : f32
    %34 = vector.broadcast %33 : f32 to vector<8x31xf32>
    %35 = arith.subf %28, %34 : vector<8x31xf32>
    %36 = arith.mulf %35, %35 : vector<8x31xf32>
    %37 = vector.shape_cast %36 : vector<8x31xf32> to vector<1x8x31xf32>
    %cst_8 = arith.constant dense<0.000000e+00> : vector<1xf32>
    %38 = vector.multi_reduction <add>, %37, %cst_8 [1, 2] : vector<1x8x31xf32> to vector<1xf32>
    %39 = vector.shape_cast %38 : vector<1xf32> to vector<1x1x1xf32>
    %40 = vector.extract %39[0, 0, 0] : f32 from vector<1x1x1xf32>
    %cst_9 = arith.constant 2.480000e+02 : f32
    %41 = arith.divf %40, %cst_9 : f32
    %cst_10 = arith.constant 9.99999974E-6 : f32
    %42 = arith.addf %41, %cst_10 : f32
    %43 = math.rsqrt %42 : f32
    %44 = vector.broadcast %43 : f32 to vector<8x31xf32>
    %45 = arith.mulf %35, %44 : vector<8x31xf32>
    %c0_11 = arith.constant 0 : index
    %c0_12 = arith.constant 0 : index
    %46 = vector.load %arg4[%c0_11, %c0_12] : memref<8x1xf32, #tpu.memory_space<vmem>>, vector<8x1xf32>
    %47 = vector.broadcast %46 : vector<8x1xf32> to vector<8x31xf32>
    %48 = arith.mulf %45, %47 : vector<8x31xf32>
    %c0_13 = arith.constant 0 : index
    %c0_14 = arith.constant 0 : index
    %49 = vector.load %arg5[%c0_13, %c0_14] : memref<8x1xf32, #tpu.memory_space<vmem>>, vector<8x1xf32>
    %50 = vector.broadcast %49 : vector<8x1xf32> to vector<8x31xf32>
    %51 = arith.addf %48, %50 : vector<8x31xf32>
    %cst_15 = arith.constant 0.000000e+00 : f32
    %52 = vector.broadcast %cst_15 : f32 to vector<8x31xf32>
    %53 = arith.maximumf %51, %52 : vector<8x31xf32>
    %c0_16 = arith.constant 0 : index
    %c0_17 = arith.constant 0 : index
    %c0_18 = arith.constant 0 : index
    %54 = vector.load %arg6[%c0_16, %c0_17, %c0_18] : memref<1x8x31xf32, #tpu.memory_space<vmem>>, vector<1x8x31xf32>
    %55 = vector.shape_cast %54 : vector<1x8x31xf32> to vector<8x31xf32>
    %56 = vector.shape_cast %53 : vector<8x31xf32> to vector<1x8x31xf32>
    tpu.vector_store %arg6[%c0_16, %c0_17, %c0_18], %56 {strides = array<i32>} : memref<1x8x31xf32, #tpu.memory_space<vmem>>, vector<1x8x31xf32>,
    return
  }
  func.func @transform_0(%arg0: i32) -> (i32, i32, i32) {
    %c0_i32 = arith.constant 0 : i32
    %c0_i32_0 = arith.constant 0 : i32
    %c0_i32_1 = arith.constant 0 : i32
    return %arg0, %c0_i32, %c0_i32_0 : i32, i32, i32
  }
  func.func @transform_1(%arg0: i32) -> (i32, i32, i32) {
    %c0_i32 = arith.constant 0 : i32
    %c0_i32_0 = arith.constant 0 : i32
    %c0_i32_1 = arith.constant 0 : i32
    %c0_i32_2 = arith.constant 0 : i32
    return %c0_i32, %c0_i32_0, %c0_i32_1 : i32, i32, i32
  }
  func.func @transform_2(%arg0: i32) -> (i32, i32) {
    %c0_i32 = arith.constant 0 : i32
    %c0_i32_0 = arith.constant 0 : i32
    %c0_i32_1 = arith.constant 0 : i32
    return %c0_i32, %c0_i32_0 : i32, i32
  }
  func.func @transform_3(%arg0: i32) -> (i32, i32) {
    %c0_i32 = arith.constant 0 : i32
    %c0_i32_0 = arith.constant 0 : i32
    %c0_i32_1 = arith.constant 0 : i32
    return %c0_i32, %c0_i32_0 : i32, i32
  }
  func.func @transform_4(%arg0: i32) -> (i32, i32) {
    %c0_i32 = arith.constant 0 : i32
    %c0_i32_0 = arith.constant 0 : i32
    %c0_i32_1 = arith.constant 0 : i32
    return %c0_i32, %c0_i32_0 : i32, i32
  }
  func.func @transform_5(%arg0: i32) -> (i32, i32, i32) {
    %c0_i32 = arith.constant 0 : i32
    %c0_i32_0 = arith.constant 0 : i32
    %c0_i32_1 = arith.constant 0 : i32
    return %arg0, %c0_i32, %c0_i32_0 : i32, i32, i32
  }
}

</mosaic_0001>

<bundles_post_ra>
// kernel: tpu_custom_call.1
= control target key start
LH: loop header
LB: loop body
LE: loop exit
PB: predicated region body
PF: predicated region fallthrough
CT: control target
= control target key end

     0   :  { %10 = vsyncpa [#allocation3], 0  ;;  %s673_s0 = inlined_call_operand.vmem [shape: f32[2,2,32], index: 0, kind: input, shape index: {}]   ;;  %s674_s1 = inlined_call_operand.vmem [shape: f32[2,8,2], index: 1, kind: input, shape index: {}]   ;;  %s675_s2 = inlined_call_operand.vmem [shape: f32[8,1], index: 2, kind: input, shape index: {}]   ;;  %s676_s3 = inlined_call_operand.vmem [shape: f32[8,1], index: 3, kind: input, shape index: {}]   ;;  %s677_s4 = inlined_call_operand.vmem [shape: f32[8,1], index: 4, kind: input, shape index: {}]   ;;  %s678_s5 = inlined_call_operand.hbm [shape: f32[2,8,31], index: 5, kind: output, shape index: {}]  }
   0x1   :  { %12 = vsyncpa [#allocation3 + $0x1], 0  ;;  %s570_s18 = smov 0   ;;  %s572_s19 = smov 0  }
   0x2   :  { %s574_s20 = smov 0   ;;  %s576_s21 = smov 0  }
   0x3 LB: > { %s591_s22 = sadd.s32 4294967295, %s534_s21   ;;  %s403_s23 = sadd.s32 4294967294, %s534_s21   ;;  %s534_s21 = sphi %s576_s21, %s684_s21   ;;  %s530_s20 = sphi %s574_s20, %s683_s20   ;;  %s526_s19 = sphi %s572_s19, %s682_s19   ;;  %s522_s18 = sphi %s570_s18, %s681_s18  }
   0x4   : > { %s595_s24 = sadd.s32 1, %s534_s21   ;;  %s135_s25 = sadd.s32 1, %s530_s20 }
   0x5   : > { %s132_s26 = ssub.s32 %s534_s21, %s595_s24  ;;  %p145_p0 = scmp.ne.s32.totalorder %s530_s20, %s526_s19 }
   0x6   : > { %p133_p1 = scmp.eq.s32.totalorder %s132_s26, 0  ;;  %p146_p2 = scmp.eq.s32.totalorder %s591_s22, 1 }
   0x7   : > { %p151_p3 = scmp.ne.s32.totalorder %s526_s19, %s522_s18  ;;  %p152_p4 = scmp.eq.s32.totalorder %s403_s23, 1 }
   0x8   : > { %s606_s27 = scalar_select %p133_p1, %s530_s20, %s135_s25  }
   0x9   : > { %p608_p5 = por %p146_p2, %p145_p0  ;;  %p612_p6 = por %p152_p4, %p151_p3 }
   0xa   : > { %p406_p7 = scmp.ge.s32.totalorder %s534_s21, 1  ;;  %p189_p8 = scmp.lt.s32.totalorder %s534_s21, 3 }
   0xc   : > { %p190_p9 = pnand %p406_p7, %p189_p8 }
   0xd   : > { %p216_p10 = scmp.lt.s32.totalorder (!%p190_p9), %s591_s22, 1  ;;  %s538_s16 = smov (!%p190_p9), 127  }
   0xe   : > { %193 = sbr.rel (%p190_p9) target bundleno = 708 (0x2c4), region = 40  ;;  %s410_s13 = sshll.u32 (!%p190_p9), %s591_s22, 3 }
  0x13   : > { %v222_v0 = vld [vmem:[%s674_s1 + $0x8] sm:$0xff]  ;;  %v221_v1 = vld [vmem:[%s674_s1] sm:$0xff]  ;;  %v536_v2 = vmov 0   ;;  %v537_v3 = vmov 1   ;;  %s217_s11 = scalar_select %p216_p10, %s591_s22, 1  ;;  %vm255_vm0 = vcmask 252928  }
  0x14   : > { %464 = vset.pattern.permute.xlu0 %v536_v2  ;;  %465 = vset.pattern.permute.xlu1 %v537_v3  ;;  %v248_v4 = vld [vmem:[%s675_s2] sm:$0xff]  ;;  %v539_v20 = vmov 248.0  }
  0x15   : > { %239 = vperm.xlu0 %464, %v222_v0   ;;  %231 = vperm.xlu1 %465, %v221_v1   ;;  %s408_s12 = sshll.u32 %s217_s11, 1  ;;  %468 = vrcp.f32 %v539_v20  ;;  %v312_v38 = vld [vmem:[%s676_s3] sm:$0xff]  ;;  %s213_s11 = sand.u32 1, %s526_s19  }
  0x16   : > { %466 = vset.pattern.permute.xlu2 %v536_v2  ;;  %s219_s15 = scalar_lea.vmem %s673_s0, %s408_s12  ;;  %v319_v39 = vld [vmem:[%s677_s4] sm:$0xff]  ;;  %s407_s12 = sshll.u32 %s213_s11, 3 }
  0x17   : > { %251 = vperm.xlu2 %466, %v248_v4   ;;  %v220_v5 = vld [vmem:[%s219_s15] sm:$0x3]  ;;  %s329_s22 = scalar_lea.sflag [#allocation3], %s213_s11 }
  0x18   : > { %v228_v6 = vperm.slane %v220_v5, 0  ;;  %v234_v9 = vperm.slane %v220_v5, 1 }
  0x1b   : > { %v469_v21 = vpop.eup %468 }
  0x1c   : > { %v267_v22 = vmul.f32 248.0, %v469_v21  ;;  %vm271_vm1 = vweird.f32 %v469_v21 }
  0x1d   : > { %225 = vperm.xlu0 %464, %v221_v1   ;;  %467 = vset.pattern.permute.xlu1 %v536_v2 }
  0x1e   : > { %v268_v23 = vsub.f32 1.0, %v267_v22 }
  0x20   : > { %v269_v27 = vmul.f32 %v469_v21, %v268_v23 }
  0x22   : > { %v270_v30 = vadd.f32 %v469_v21, %v269_v27 }
  0x24   : > { %v272_v33 = vsel %vm271_vm1, %v469_v21, %v270_v30 }
  0x71   : > { %v252_v16 = vpop.permute.xlu2 %251 }
  0x87   : > { %v240_v7 = vpop.permute.xlu0 %239  ;;  %v232_v10 = vpop.permute.xlu1 %231 }
  0x88   : > { %v242_v8 = vmul.f32 %v240_v7, %v228_v6  ;;  %v235_v11 = vmul.f32 %v234_v9, %v232_v10 }
  0x8a   : > { %244 = vrot.lane.b32.xlu1 %v242_v8, %s538_s16 }
  0x8f   : > { %v226_v12 = vpop.permute.xlu0 %225 }
  0x90   : > { %v229_v13 = vmul.f32 %v228_v6, %v226_v12 }
  0x92   : > { %v236_v14 = vadd.f32 %v235_v11, %v229_v13  ;;  %315 = vperm.xlu1 %467, %v312_v38  }
  0x9a   : > { %322 = vperm.xlu1 %467, %v319_v39  }
  0xfc   : > { %v245_v15 = vpop.permute.xlu1 %244 }
  0xfd   : > { %v247_v17 = vadd.f32 %v245_v15, %v236_v14 }
  0xff   : > { %v254_v18 = vadd.f32 %v252_v16, %v247_v17 }
 0x101   : > { %v256_v19 = vsel %vm255_vm0, %v254_v18, 0.0 }
 0x102   : > { %257 = vadd.xlane.f32.xlu2 %v256_v19 }
 0x104   : > { %v316_v55 = vpop.permute.xlu1 %315 }
 0x10c   : > { %v323_v59 = vpop.permute.xlu1 %322 }
 0x175   : > { %v258_v24 = vpop.xlane.xlu2 %257 }
 0x176   : > { %v259_v25 = vrot.slane %v258_v24, 4 }
 0x178   : > { %v260_v26 = vadd.f32 %v259_v25, %v258_v24 }
 0x17a   : > { %v261_v28 = vrot.slane %v260_v26, 2 }
 0x17c   : > { %v262_v29 = vadd.f32 %v261_v28, %v260_v26 }
 0x17e   : > { %v263_v31 = vrot.slane %v262_v29, 1 }
 0x180   : > { %v264_v32 = vadd.f32 %v263_v31, %v262_v29 }
 0x182   : > { %413 = vpush %v264_v32 }
 0x183   : > { %415 = vpush %v272_v33 }
 0x1b3   : > { %s414_s17 = spop %413 }
 0x1b4   : > { %s416_s23 = spop %415 }
 0x1b5   : > { %s274_s25 = smul.f32 %s416_s23, %s414_s17  ;;  %s339_s17 = scalar_lea.hbm %s678_s5, %s410_s13 }
 0x1b6   : > { %s343_s26 = sshll.u32 %s339_s17, 4  ;;  %s344_s26 = int_to_ptr.hbm [resolvable:$true] %s343_s26 }
 0x1b7   : > { %v275_v34 = vstv %s274_s25  ;;  %s486_s30 = sshra.s32 %s344_s26, 4  ;;  %s487_s30 = int_to_ptr.hbm [resolvable:$true] %s486_s30 }
 0x1b8   : > { %v276_v35 = vsub.f32 %v254_v18, %v275_v34  ;;  %s488_s6 = scalar_lea.hbm %s487_s30, 8  ;;  %p493_p0 = scmp.lt.s32.totalorder %s487_s30, %s678_s5 }
 0x1b9   : > { %p489_p11 = scmp.ne.s32.totalorder %s487_s30, %s488_s6 }
 0x1ba   : > { %v277_v36 = vmul.f32 %v276_v35, %v276_v35 }
 0x1bb   : > { %p490_p12 = pnand %p489_p11, %p608_p5 }
 0x1bc   : > { %v278_v37 = vsel %vm255_vm0, %v277_v36, 0.0 }
 0x1bd   : > { %279 = vadd.xlane.f32.xlu0 %v278_v37  ;;  %p491_p13 = pneg %p490_p12 }
 0x230   : > { %v280_v40 = vpop.xlane.xlu0 %279 }
 0x231   : > { %v281_v41 = vrot.slane %v280_v40, 4 }
 0x233   : > { %v282_v42 = vadd.f32 %v281_v41, %v280_v40 }
 0x235   : > { %v283_v43 = vrot.slane %v282_v42, 2 }
 0x237   : > { %v284_v44 = vadd.f32 %v283_v43, %v282_v42 }
 0x239   : > { %v285_v45 = vrot.slane %v284_v44, 1 }
 0x23b   : > { %v286_v46 = vadd.f32 %v285_v45, %v284_v44 }
 0x23d   : > { %417 = vpush %v286_v46 }
 0x26e   : > { %s418_s8 = spop %417 }
 0x26f   : > { %s296_s9 = smul.f32 %s418_s8, %s416_s23  ;;  %s215_s23 = scalar_lea.vmem [#allocation2], %s407_s12 }
 0x270   : > { %s341_s25 = sshll.u32 %s215_s23, 4  ;;  %s342_s25 = int_to_ptr.vmem [resolvable:$true] %s341_s25 }
 0x271   : > { %s297_s10 = sadd.f32 1e-05, %s296_s9  ;;  %s492_s9 = scalar_lea.hbm %s678_s5, 16 }
 0x272   : > { %p494_p1 = scmp.lt.s32.totalorder %s492_s9, %s488_s6 }
 0x273   : > { %v298_v47 = vstv %s297_s10 }
 0x274   : > { %470 = vrsqrt.f32 %v298_v47  ;;  %vm305_vm3 = vweird.f32 %v298_v47  ;;  %p495_p2 = por %p494_p1, %p493_p0 }
 0x276   : > { %p496_p3 = pnand %p495_p2, %p491_p13 }
 0x27a   : > { %v471_v48 = vpop.eup %470 }
 0x27b   : > { %v300_v49 = vmul.f32 %v471_v48, %v298_v47  ;;  %vm306_vm2 = vweird.f32 %v471_v48 }
 0x27c   : > { %vm307_vm4 = vmor %vm305_vm3, %vm306_vm2 }
 0x27d   : > { %v301_v50 = vmul.f32 %v471_v48, %v300_v49 }
 0x27f   : > { %v302_v51 = vmul.f32 0.5, %v301_v50 }
 0x281   : > { %v303_v52 = vsub.f32 1.5, %v302_v51 }
 0x283   : > { %v304_v53 = vmul.f32 %v471_v48, %v303_v52 }
 0x285   : > { %v308_v54 = vsel %vm307_vm4, %v471_v48, %v304_v53 }
 0x286   : > { %419 = vpush %v308_v54 }
 0x2b7   : > { %s420_s14 = spop %419 }
 0x2b8   : > { %v310_v56 = vstv %s420_s14 }
 0x2b9   : > { %v311_v57 = vmul.f32 %v310_v56, %v276_v35 }
 0x2bb   : > { %v318_v58 = vmul.f32 %v316_v55, %v311_v57 }
 0x2bd   : > { %v325_v60 = vadd.f32 %v323_v59, %v318_v58 }
 0x2bf   : > { %v326_v61 = vmax.f32 %v325_v60, 0.0 }
 0x2c1   : > { %327 = vst.msk [vmem:[%s215_s23] sm:$0xff] %vm255_vm0, %v326_v61 }
 0x2c2   : > { %499 = shalt.err (!%p496_p3)
}
 0x2c3   : > { %421 = dma.vmem_to_hbm [thread:$0]  (%p608_p5), %s342_s25, 128, %s344_s26, %s329_s22  }
 0x2c4 PF: > { %p427_p4 = scmp.ge.s32.totalorder %s534_s21, 2  ;;  %s355_s11 = sand.u32 1, %s522_s18  }
 0x2c5   : > { %s356_s13 = scalar_lea.sflag [#allocation3], %s355_s11 }
 0x2c6   : > { %p424_p7 = pnand %p427_p4, %p612_p6 }
 0x2c8   : > { %p425_p8 = pneg %p424_p7 }
 0x2ca   : > { %517 = dma.done.wait (%p425_p8), %s356_s13, 128  }
 0x2cb   : > { %519 = vsyncadd (%p425_p8), %s356_s13, 4294967168  ;;  %p15_p9 = scmp.ge.s32.totalorder %s595_s24, 4   ;;  %s681_s18 = smov %s526_s19 }
 0x2cc   : > { %s682_s19 = smov %s530_s20  ;;  %s683_s20 = smov %s606_s27 }
 0x2cd   : > { %s684_s21 = smov %s595_s24  ;;  %17 = sbr.rel (!%p15_p9) target bundleno = 3 (0x3), region = 75 }
 0x2d2   :  { %362 = vsyncpa [#allocation3], 1 }
 0x2d3   :  { %364 = vsyncpa [#allocation3 + $0x1], 1 }

</bundles_post_ra>
